<compile_context>
chip_gen: v7x
topology: tpu7x:2x2x1
jax: 0.10.0
libtpu: 0.0.40
codegen_flags: <defaults>
</compile_context>

<pallas_src>
import jax
import jax.numpy as jnp
from jax.experimental import pallas as pl
from jax.experimental.pallas import tpu as pltpu

# torch.nn.functional.selu built-in constants.
_SELU_ALPHA = 1.6732632423543772
_SELU_SCALE = 1.0507009873554805

# SELU_Range module parameters (__init__ defaults).
_MODULE_SCALE = 1.0507
_MODULE_OFFSET = 5.0

# Folded constants:
#   out = where(x > 0, C_POS * x, C_NEG * exp(x) - C_NEG) + 5.0
_C_POS = _MODULE_SCALE * _SELU_SCALE
_C_NEG = _C_POS * _SELU_ALPHA


def _selu_range_kernel(x_ref, o_ref):
    # f32 compute is safe on all of v5e/v6e/v7x; the kernel is HBM-bound so
    # the upcast is not on the critical path.
    xf = x_ref[...].astype(jnp.float32)
    pos = _C_POS * xf
    neg = _C_NEG * jnp.exp(xf) - _C_NEG            # exp runs on the EUP slot
    o_ref[...] = (jnp.where(xf > 0, pos, neg) + _MODULE_OFFSET).astype(o_ref.dtype)


def _selu_range_jnp(x):
    """Pure-jnp fallback / reference (expm1 form, mirrors torch)."""
    xf = x.astype(jnp.float32)
    out = jnp.where(xf > 0, _C_POS * xf, _C_NEG * jnp.expm1(xf)) + _MODULE_OFFSET
    return out.astype(x.dtype)


def _choose_layout(n, itemsize, target_bytes=4 << 20):
    """Pick (lane, row_tile, rows, needs_pad) for a lane-dense 2-D slab."""
    # Sublane packing multiple: 8 rows for 32-bit, 16 for 16-bit, 32 for 8-bit.
    sub = {4: 8, 2: 16, 1: 32}.get(itemsize, 8)

    # Widest lane dim (multiple of 128) that divides n exactly -> no padding.
    lane = None
    for cand in (1024, 512, 256, 128):
        if n >= cand and n % cand == 0:
            lane = cand
            break
    needs_pad = lane is None
    if needs_pad:
        lane = 128                      # pad only to the next 128 multiple

    rows = pl.cdiv(n, lane)

    # ~4 MiB blocks, row count rounded to the sublane packing multiple.
    target_rows = max(sub, (target_bytes // (lane * itemsize)) // sub * sub)
    row_tile = min(target_rows, (rows // sub) * sub)
    if row_tile == 0:
        # Tiny input: block spans the full (short) row axis, which is allowed
        # when the block dim equals the array dim.
        row_tile = rows
    return lane, row_tile, rows, needs_pad


def selu_range(x, *, small_input_threshold=0):
    """SELU_Range forward (scale * selu(x) + 5.0), elementwise on any shape."""
    n = x.size
    if n == 0:
        return x
    if n <= small_input_threshold:
        # Optional: let XLA fuse tiny activations with producers/consumers
        # instead of paying pallas_call launch + HBM round-trip cost.
        return _selu_range_jnp(x)

    orig_shape = x.shape
    dtype = x.dtype
    itemsize = jnp.dtype(dtype).itemsize

    lane, row_tile, rows, needs_pad = _choose_layout(n, itemsize)

    x_flat = jnp.ravel(x)
    if needs_pad:
        # Truly ragged n (n % 128 != 0): pad by <= 127 elements only.
        x_flat = jnp.pad(x_flat, (0, rows * lane - n))
    x2d = x_flat.reshape(rows, lane)

    grid = (pl.cdiv(rows, row_tile),)   # partial last block is masked by Pallas
    out2d = pl.pallas_call(
        _selu_range_kernel,
        out_shape=jax.ShapeDtypeStruct((rows, lane), dtype),
        grid=grid,
        in_specs=[pl.BlockSpec((row_tile, lane), lambda i: (i, 0))],
        out_specs=pl.BlockSpec((row_tile, lane), lambda i: (i, 0)),
        compiler_params=pltpu.CompilerParams(
            dimension_semantics=("parallel",),
            # 2 in + 2 out double-buffered 4 MiB blocks = 16 MiB; 32 MiB gives
            # headroom and is safe on v5e (128 MiB phys) and v7x (64 MiB phys).
            vmem_limit_bytes=32 * 1024 * 1024,
        ),
        cost_estimate=pl.CostEstimate(
            flops=3 * n,
            transcendentals=n,
            bytes_accessed=2 * n * itemsize,
        ),
    )(x2d)

    out_flat = out2d.reshape(-1)
    if needs_pad:
        out_flat = out_flat[:n]
    return out_flat.reshape(orig_shape)


if __name__ == "__main__":
    key = jax.random.PRNGKey(0)
    k0, k1, k2 = jax.random.split(key, 3)

    # 1) Conv-style NCHW activation (n = 2048, lane=1024, single block).
    x = jax.random.normal(k0, (2, 4, 16, 16), dtype=jnp.float32)
    out = jax.block_until_ready(selu_range(x))
    ref = _selu_range_jnp(x)
    assert out.shape == x.shape and out.dtype == x.dtype
    assert jnp.allclose(out, ref, atol=1e-5, rtol=1e-5)

    # 2) Lane-aligned but NOT block-aligned (n = 13312 -> rows=13, row_tile=8,
    #    grid=2 with a masked partial boundary block, no padding copies).
    x1 = jax.random.normal(k1, (4, 16, 16, 13), dtype=jnp.float32)
    out1 = jax.block_until_ready(selu_range(x1))
    ref1 = _selu_range_jnp(x1)
    assert out1.shape == x1.shape and out1.dtype == x1.dtype
    assert jnp.allclose(out1, ref1, atol=1e-5, rtol=1e-5)

    # 3) Truly ragged size (n = 1155): <=127-element tail pad path.
    x2 = jax.random.normal(k2, (3, 5, 7, 11), dtype=jnp.float32)
    out2 = jax.block_until_ready(selu_range(x2))
    ref2 = _selu_range_jnp(x2)
    assert out2.shape == x2.shape and out2.dtype == x2.dtype
    assert jnp.allclose(out2, ref2, atol=1e-5, rtol=1e-5)

    print("KERNEL_OK")
</pallas_src>

<mosaic_0001>
module attributes {stable_mosaic.version = 11 : i64} {
  func.func @_selu_range_kernel(%arg0: i32, %arg1: memref<2x1024xf32, #tpu.memory_space<vmem>>, %arg2: memref<2x1024xf32, #tpu.memory_space<vmem>>) attributes {dimension_semantics = [#tpu.dimension_semantics<parallel>], iteration_bounds = array<i64: 1>, scalar_prefetch = 0 : i64, scratch_operands = 0 : i64, tpu.core_type = #tpu.core_type<tc>, window_params = [{transform_indices = @transform_0, window_bounds = array<i64: 2, 1024>}, {transform_indices = @transform_1, window_bounds = array<i64: 2, 1024>}]} {
    %c0 = arith.constant 0 : index
    %c0_0 = arith.constant 0 : index
    %0 = vector.load %arg1[%c0, %c0_0] : memref<2x1024xf32, #tpu.memory_space<vmem>>, vector<2x1024xf32>
    %cst = arith.constant 1.10397148 : f32
    %1 = vector.broadcast %cst : f32 to vector<2x1024xf32>
    %2 = arith.mulf %1, %0 : vector<2x1024xf32>
    %3 = math.exp %0 : vector<2x1024xf32>
    %cst_1 = arith.constant 1.84723496 : f32
    %4 = vector.broadcast %cst_1 : f32 to vector<2x1024xf32>
    %5 = arith.mulf %4, %3 : vector<2x1024xf32>
    %cst_2 = arith.constant 1.84723496 : f32
    %6 = vector.broadcast %cst_2 : f32 to vector<2x1024xf32>
    %7 = arith.subf %5, %6 : vector<2x1024xf32>
    %cst_3 = arith.constant 0.000000e+00 : f32
    %8 = vector.broadcast %cst_3 : f32 to vector<2x1024xf32>
    %9 = arith.cmpf ogt, %0, %8 : vector<2x1024xf32>
    %10 = arith.select %9, %2, %7 : vector<2x1024xi1>, vector<2x1024xf32>
    %cst_4 = arith.constant 5.000000e+00 : f32
    %11 = vector.broadcast %cst_4 : f32 to vector<2x1024xf32>
    %12 = arith.addf %10, %11 : vector<2x1024xf32>
    %c0_5 = arith.constant 0 : index
    %c0_6 = arith.constant 0 : index
    %13 = vector.load %arg2[%c0_5, %c0_6] : memref<2x1024xf32, #tpu.memory_space<vmem>>, vector<2x1024xf32>
    tpu.vector_store %arg2[%c0_5, %c0_6], %12 {strides = array<i32>} : memref<2x1024xf32, #tpu.memory_space<vmem>>, vector<2x1024xf32>,
    return
  }
  func.func @transform_0(%arg0: i32) -> (i32, i32) {
    %c0_i32 = arith.constant 0 : i32
    %c0_i32_0 = arith.constant 0 : i32
    return %arg0, %c0_i32 : i32, i32
  }
  func.func @transform_1(%arg0: i32) -> (i32, i32) {
    %c0_i32 = arith.constant 0 : i32
    %c0_i32_0 = arith.constant 0 : i32
    return %arg0, %c0_i32 : i32, i32
  }
}

</mosaic_0001>

<bundles_post_ra>
// kernel: tpu_custom_call.1
= control target key start
LH: loop header
LB: loop body
LE: loop exit
PB: predicated region body
PF: predicated region fallthrough
CT: control target
= control target key end

     0   :  { %6 = vsyncpa [#allocation3], 0  ;;  %s148_s0 = inlined_call_operand.hbm [shape: f32[2,1024], index: 0, kind: input, shape index: {}]   ;;  %s149_s1 = inlined_call_operand.hbm [shape: f32[2,1024], index: 1, kind: output, shape index: {}]  }
   0x1   :  { %7 = vsyncpa [#allocation4], 0  ;;  %s112_s6 = smov [#allocation2]   ;;  %s64_s10 = scalar_lea.hbm %s148_s0, 256 }
   0x2   :  { %s14_s7 = sshll.u32 %s112_s6, 4  ;;  %p65_p0 = scmp.ne.s32.totalorder %s148_s0, %s64_s10  ;;  %s15_s7 = int_to_ptr.vmem [resolvable:$true] %s14_s7 }
   0x3   :  { %p68_p1 = scmp.lt.u32.totalorder %s64_s10, %s148_s0 }
   0x5   :  { %p70_p2 = pnand %p68_p1, %p65_p0 }
   0x7   :  { %73 = shalt.err (!%p70_p2)
}
   0x8   :  { %s74_s15 = scalar_lea.vmem %s15_s7, 256  ;;  %p79_p4 = scmp.lt.s32.totalorder %s15_s7, %s15_s7 }
   0x9   :  { %p75_p3 = scmp.ne.s32.totalorder %s15_s7, %s74_s15  ;;  %p80_p5 = scmp.lt.s32.totalorder %s74_s15, %s74_s15 }
   0xb   :  { %p81_p6 = por %p80_p5, %p79_p4 }
   0xd   :  { %p82_p7 = pnand %p81_p6, %p75_p3 }
   0xf   :  { %85 = shalt.err (!%p82_p7)
}
  0x10   :  { %17 = dma.hbm_to_vmem [thread:$0]  %s148_s0, 256, %s15_s7, [#allocation3]  }
  0x11   :  { %108 = dma.done.wait [#allocation3], 256  }
  0x12   :  { %109 = vsyncadd [#allocation3], 4294967040  ;;  %v21_v0 = vld [vmem:[#allocation2] sm:$0xff]  ;;  %v22_v1 = vld [vmem:[#allocation2 + $0x8] sm:$0xff]  ;;  %s113_s18 = smov [#allocation5]  }
  0x13   :  { %v25_v2 = vmul.f32 1.442695, %v21_v0  ;;  %v27_v3 = vmul.f32 1.442695, %v22_v1  ;;  %v23_v6 = vmul.f32 1.1039715, %v21_v0 }
  0x14   :  { %vm33_vm0 = vcmp.gt.f32.partialorder %v21_v0, 0.0  ;;  %v24_v8 = vmul.f32 1.1039715, %v22_v1  ;;  %vm34_vm1 = vcmp.gt.f32.partialorder %v22_v1, 0.0  ;;  %s47_s0 = sshll.u32 %s113_s18, 4  ;;  %s48_s0 = int_to_ptr.vmem [resolvable:$true] %s47_s0 }
  0x15   :  { %60 = vpow2.f32 %v25_v2  ;;  %s86_s19 = scalar_lea.vmem %s48_s0, 256  ;;  %p91_p9 = scmp.lt.s32.totalorder %s48_s0, %s48_s0 }
  0x16   :  { %62 = vpow2.f32 %v27_v3  ;;  %p87_p8 = scmp.ne.s32.totalorder %s48_s0, %s86_s19  ;;  %p92_p10 = scmp.lt.s32.totalorder %s86_s19, %s86_s19 }
  0x18   :  { %p93_p11 = por %p92_p10, %p91_p9 }
  0x1a   :  { %p94_p12 = pnand %p93_p11, %p87_p8 }
  0x1f   :  { %v61_v4 = vpop.eup %60 }
  0x20   :  { %v63_v5 = vpop.eup %62  ;;  %v29_v7 = vmul.f32 1.847235, %v61_v4 }
  0x21   :  { %v30_v9 = vmul.f32 1.847235, %v63_v5 }
  0x22   :  { %v56_v10 = vadd.f32 -1.847235, %v29_v7 }
  0x23   :  { %v57_v11 = vadd.f32 -1.847235, %v30_v9 }
  0x24   :  { %v35_v12 = vsel %vm33_vm0, %v23_v6, %v56_v10 }
  0x25   :  { %v37_v13 = vadd.f32 5.0, %v35_v12  ;;  %v36_v14 = vsel %vm34_vm1, %v24_v8, %v57_v11 }
  0x26   :  { %v38_v15 = vadd.f32 5.0, %v36_v14 }
  0x27   :  { %39 = vst [vmem:[#allocation5] sm:$0xff] %v37_v13 }
  0x28   :  { %40 = vst [vmem:[#allocation5 + $0x8] sm:$0xff] %v38_v15 }
  0x29   :  { %97 = shalt.err (!%p94_p12)
}
  0x2a   :  { %s98_s22 = scalar_lea.hbm %s149_s1, 256 }
  0x2b   :  { %p99_p13 = scmp.ne.s32.totalorder %s149_s1, %s98_s22  ;;  %p102_p0 = scmp.lt.u32.totalorder %s98_s22, %s149_s1 }
  0x2d   :  { %p104_p1 = pnand %p102_p0, %p99_p13 }
  0x2f   :  { %107 = shalt.err (!%p104_p1)
}
  0x30   :  { %50 = dma.vmem_to_hbm [thread:$0]  %s48_s0, 256, %s149_s1, [#allocation4]  }
  0x31   :  { %110 = dma.done.wait [#allocation4], 256  }
  0x32   :  { %111 = vsyncadd [#allocation4], 4294967040 }
  0x33   :  { %54 = vsyncpa [#allocation3], 1 }
  0x34   :  { %55 = vsyncpa [#allocation4], 1 }

</bundles_post_ra>
